<compile_context>
chip_gen: v6e
topology: v6e:2x2x1
jax: 0.10.0
libtpu: 0.0.40
codegen_flags: <defaults>
</compile_context>

<pallas_src>
import jax
import jax.numpy as jnp
from jax.experimental import pallas as pl
from jax.experimental.pallas import tpu as pltpu

LANES = 128
_MiB = 1024 * 1024


def _round_up(v, m):
    return ((v + m - 1) // m) * m


def _tpu_chip_info():
    """Return (vmem_capacity_bytes, tensorcores_per_chip, is_v5_class) with safe fallbacks."""
    vmem_bytes = 64 * _MiB  # conservative default (v7x-sized VMEM)
    num_tc = 1
    is_v5 = False
    try:
        info = pltpu.get_tpu_info()
        vmem_bytes = int(getattr(info, "vmem_capacity_bytes", vmem_bytes))
    except Exception:
        pass
    try:
        kind = jax.devices()[0].device_kind.lower()
        if "v7" in kind:
            num_tc = 2  # two TensorCores per chip on v7x
        if "v5" in kind:
            is_v5 = True  # no bf16 VPU/EUP -> keep f32 compute path
    except Exception:
        pass
    return vmem_bytes, num_tc, is_v5


def _silu_math(x):
    # sigmoid via tanh: one EUP op instead of exp + full reciprocal.
    return x * (0.5 * (jnp.tanh(x * 0.5) + 1.0))


def _make_silu_kernel(compute_dtype):
    def kernel(x_ref, o_ref):
        x = x_ref[...].astype(compute_dtype)
        o_ref[...] = _silu_math(x).astype(o_ref.dtype)

    return kernel


def _choose_tile_rows(rows, itemsize, num_tc, vmem_limit_bytes):
    """Row-tile choice: ~4-8 MiB blocks, sublane-aligned, fits 4 double-buffered
    slabs in the scoped-VMEM budget; on v7x keep ~2 blocks per TensorCore with a
    >=2048-row (>=1 MiB f32) floor; single-TC chips keep one maximal stream."""
    target_bytes = 8 * _MiB
    # 2 input + 2 output double-buffered slabs must fit with headroom.
    max_block_bytes = max(_MiB, (vmem_limit_bytes - 8 * _MiB) // 4)
    target_bytes = min(target_bytes, max_block_bytes)

    tr = max(8, (target_bytes // (LANES * itemsize)) // 8 * 8)
    if itemsize < 4:
        # bf16 / int8 pack multiple rows per sublane; keep tr sublane-friendly.
        tr = _round_up(tr, 16)

    if num_tc >= 2:
        # v7x megacore sharding: ~2 blocks per TensorCore, never below 1-2 MiB.
        min_blocks = 2 * num_tc
        floor_rows = 2048 if itemsize >= 4 else _round_up(2048, 16)
        if rows >= min_blocks * floor_rows:
            per_block = _round_up(-(-rows // min_blocks), 8)
            tr = min(tr, max(floor_rows, per_block))

    # Never make the block much larger than the whole (small) array.
    tr = min(tr, _round_up(rows, 8))
    return tr


def nonlinearity(x):
    """Elementwise x * sigmoid(x) on an NCHW (or any-shape) array."""
    orig_shape = x.shape
    dtype = x.dtype
    total = int(x.size)
    if total == 0:
        return x

    vmem_bytes, num_tc, is_v5 = _tpu_chip_info()
    # Generation-aware scoped-VMEM budget: ~3/4 of physical, capped at 64 MiB
    # (-> ~48 MiB on v7x's 64 MiB VMEM, 64 MiB on v5e/v6e's 128 MiB).
    vmem_limit = int(min(64 * _MiB, max(32 * _MiB, (vmem_bytes * 3) // 4)))

    # Compute dtype: native bf16 on bf16-capable chips (v6e/v7x), f32 otherwise.
    if dtype == jnp.bfloat16 and not is_v5:
        compute_dtype = jnp.bfloat16
    else:
        compute_dtype = jnp.float32

    itemsize = jnp.dtype(dtype).itemsize
    x_flat = jnp.reshape(x, (total,))

    main = total - (total % LANES)
    if main == 0:
        # Tiny (<128 element) tensor: not worth a kernel launch.
        out = _silu_math(x_flat.astype(compute_dtype)).astype(dtype)
        return jnp.reshape(out, orig_shape)

    rows = main // LANES
    head = x_flat if main == total else x_flat[:main]
    x2d = jnp.reshape(head, (rows, LANES))

    tr = _choose_tile_rows(rows, itemsize, num_tc, vmem_limit)
    grid = (pl.cdiv(rows, tr),)  # ragged last block masked by Pallas

    out2d = pl.pallas_call(
        _make_silu_kernel(compute_dtype),
        out_shape=jax.ShapeDtypeStruct((rows, LANES), dtype),
        grid_spec=pltpu.PrefetchScalarGridSpec(
            num_scalar_prefetch=0,
            grid=grid,
            in_specs=[pl.BlockSpec((tr, LANES), lambda i: (i, 0))],
            out_specs=pl.BlockSpec((tr, LANES), lambda i: (i, 0)),
        ),
        compiler_params=pltpu.CompilerParams(
            dimension_semantics=("parallel",),
            vmem_limit_bytes=vmem_limit,
        ),
    )(x2d)

    out_flat = jnp.reshape(out2d, (main,))
    if main != total:
        # Ragged (<128 element) tail: plain XLA epilogue; avoids a full-tensor
        # pad + slice pass (keeps the kernel at exactly 1x read + 1x write).
        tail = x_flat[main:].astype(compute_dtype)
        out_flat = jnp.concatenate([out_flat, _silu_math(tail).astype(dtype)])
    return jnp.reshape(out_flat, orig_shape)


if __name__ == "__main__":
    key = jax.random.PRNGKey(0)
    # NCHW input, matching PyTorch conv-style layout convention.
    x = jax.random.normal(key, (2, 4, 16, 16), dtype=jnp.float32)

    y = nonlinearity(x)
    y = jax.block_until_ready(y)

    # Pure-JAX reference check (tanh-form sigmoid agrees with expit to ~ULPs in f32).
    y_ref = x * jax.nn.sigmoid(x)
    assert y.shape == x.shape and y.dtype == x.dtype
    assert jnp.max(jnp.abs(y - y_ref)) < 1e-5

    print("KERNEL_OK")
</pallas_src>

<mosaic_0001>
module attributes {stable_mosaic.version = 11 : i64} {
  func.func @kernel(%arg0: i32, %arg1: memref<16x128xf32, #tpu.memory_space<vmem>>, %arg2: memref<16x128xf32, #tpu.memory_space<vmem>>) attributes {dimension_semantics = [#tpu.dimension_semantics<parallel>], iteration_bounds = array<i64: 1>, scalar_prefetch = 0 : i64, scratch_operands = 0 : i64, tpu.core_type = #tpu.core_type<tc>, window_params = [{transform_indices = @transform_0, window_bounds = array<i64: 16, 128>}, {transform_indices = @transform_1, window_bounds = array<i64: 16, 128>}]} {
    %c0 = arith.constant 0 : index
    %c0_0 = arith.constant 0 : index
    %0 = vector.load %arg1[%c0, %c0_0] : memref<16x128xf32, #tpu.memory_space<vmem>>, vector<16x128xf32>
    %cst = arith.constant 5.000000e-01 : f32
    %1 = vector.broadcast %cst : f32 to vector<16x128xf32>
    %2 = arith.mulf %0, %1 : vector<16x128xf32>
    %3 = math.tanh %2 : vector<16x128xf32>
    %cst_1 = arith.constant 1.000000e+00 : f32
    %4 = vector.broadcast %cst_1 : f32 to vector<16x128xf32>
    %5 = arith.addf %3, %4 : vector<16x128xf32>
    %cst_2 = arith.constant 5.000000e-01 : f32
    %6 = vector.broadcast %cst_2 : f32 to vector<16x128xf32>
    %7 = arith.mulf %6, %5 : vector<16x128xf32>
    %8 = arith.mulf %0, %7 : vector<16x128xf32>
    %c0_3 = arith.constant 0 : index
    %c0_4 = arith.constant 0 : index
    %9 = vector.load %arg2[%c0_3, %c0_4] : memref<16x128xf32, #tpu.memory_space<vmem>>, vector<16x128xf32>
    tpu.vector_store %arg2[%c0_3, %c0_4], %8 {strides = array<i32>} : memref<16x128xf32, #tpu.memory_space<vmem>>, vector<16x128xf32>,
    return
  }
  func.func @transform_0(%arg0: i32) -> (i32, i32) {
    %c0_i32 = arith.constant 0 : i32
    %c0_i32_0 = arith.constant 0 : i32
    return %arg0, %c0_i32 : i32, i32
  }
  func.func @transform_1(%arg0: i32) -> (i32, i32) {
    %c0_i32 = arith.constant 0 : i32
    %c0_i32_0 = arith.constant 0 : i32
    return %arg0, %c0_i32 : i32, i32
  }
}

</mosaic_0001>

<bundles_post_ra>
// kernel: tpu_custom_call.1
= control target key start
LH: loop header
LB: loop body
LE: loop exit
PB: predicated region body
PF: predicated region fallthrough
CT: control target
= control target key end

     0   :  { %6 = vsyncpa [#allocation3], 0  ;;  %s132_s0 = inlined_call_operand.hbm [shape: f32[16,128], index: 0, kind: input, shape index: {}]   ;;  %s133_s1 = inlined_call_operand.hbm [shape: f32[16,128], index: 1, kind: output, shape index: {}]  }
   0x1   :  { %7 = vsyncpa [#allocation4], 0  ;;  %s106_s6 = smov [#allocation2]  }
   0x2   :  { %s13_s7 = sshll.u32 %s106_s6, 4  ;;  %s14_s7 = int_to_ptr.vmem [resolvable:$true] %s13_s7 }
   0x3   :  { %s70_s8 = scalar_lea.vmem %s14_s7, 256  ;;  %p75_p1 = scmp.lt.s32.totalorder %s14_s7, %s14_s7 }
   0x4   :  { %p71_p0 = scmp.ne.s32.totalorder %s14_s7, %s70_s8  ;;  %p76_p2 = scmp.lt.s32.totalorder %s70_s8, %s70_s8 }
   0x6   :  { %p77_p3 = por %p76_p2, %p75_p1 }
   0x8   :  { %p78_p4 = pnand %p77_p3, %p71_p0 }
   0xa   :  { %81 = shalt.err (!%p78_p4)
}
   0xb   :  { %s107_s9 = smov 128   ;;  %s108_s10 = smov 8  }
   0xc   :  { %19 = dma.hbm_to_vmem [thread:$0]  %s132_s0, 256, %s14_s7, [#allocation3], %s107_s9, %s107_s9, %s108_s10  }
   0xd   :  { %102 = dma.done.wait [#allocation3], 256  }
   0xe   :  { %103 = vsyncadd [#allocation3], 4294967040  ;;  %v23_v0 = vld [vmem:[#allocation2] sm:$0xff]  ;;  %v24_v1 = vld [vmem:[#allocation2 + $0x8] sm:$0xff]  ;;  %s109_s13 = smov [#allocation5]  }
   0xf   :  { %v25_v2 = vmul.f32 0.5, %v23_v0  ;;  %v26_v3 = vmul.f32 0.5, %v24_v1  ;;  %s42_s14 = sshll.u32 %s109_s13, 4  ;;  %s43_s14 = int_to_ptr.vmem [resolvable:$true] %s42_s14 }
  0x10   :  { %s82_s0 = scalar_lea.vmem %s43_s14, 256  ;;  %p87_p6 = scmp.lt.s32.totalorder %s43_s14, %s43_s14 }
  0x11   :  { %58 = vtanh.f32 %v25_v2  ;;  %p83_p5 = scmp.ne.s32.totalorder %s43_s14, %s82_s0  ;;  %p88_p7 = scmp.lt.s32.totalorder %s82_s0, %s82_s0 }
  0x12   :  { %60 = vtanh.f32 %v26_v3 }
  0x13   :  { %p89_p8 = por %p88_p7, %p87_p6 }
  0x15   :  { %p90_p9 = pnand %p89_p8, %p83_p5 }
  0x1e   :  { %v59_v4 = vpop.eup %58 }
  0x1f   :  { %v61_v5 = vpop.eup %60  ;;  %v29_v6 = vadd.f32 1.0, %v59_v4 }
  0x20   :  { %v30_v7 = vadd.f32 1.0, %v61_v5 }
  0x21   :  { %v31_v8 = vmul.f32 0.5, %v29_v6 }
  0x22   :  { %v32_v9 = vmul.f32 0.5, %v30_v7 }
  0x23   :  { %v33_v10 = vmul.f32 %v31_v8, %v23_v0 }
  0x24   :  { %v34_v11 = vmul.f32 %v32_v9, %v24_v1 }
  0x25   :  { %35 = vst [vmem:[#allocation5] sm:$0xff] %v33_v10 }
  0x26   :  { %36 = vst [vmem:[#allocation5 + $0x8] sm:$0xff] %v34_v11 }
  0x27   :  { %93 = shalt.err (!%p90_p9)
}
  0x28   :  { %48 = dma.vmem_to_hbm [thread:$0]  %s43_s14, 256, %s133_s1, [#allocation4], %s107_s9, %s107_s9, %s108_s10  }
  0x29   :  { %104 = dma.done.wait [#allocation4], 256  }
  0x2a   :  { %105 = vsyncadd [#allocation4], 4294967040 }
  0x2b   :  { %52 = vsyncpa [#allocation3], 1 }
  0x2c   :  { %53 = vsyncpa [#allocation4], 1 }

</bundles_post_ra>
